<compile_context>
chip_gen: v6e
topology: v6e:2x2x1
jax: 0.10.0
libtpu: 0.0.40
codegen_flags: <defaults>
</compile_context>

<pallas_src>
import itertools
import math

import numpy as np
import jax
import jax.numpy as jnp
from jax.experimental import pallas as pl
from jax.experimental.pallas import tpu as pltpu


# ---------------- small config consistent with the module ----------------
DIM = 32              # embedding dim C   (module default 384)
KEY_DIM = 8           # (module default 32)
NUM_HEADS = 2         # (module default 8)
ATTN_RATIO = 2
RES = 4               # resolution  -> N = 16
N = RES * RES
NH_KD = KEY_DIM * NUM_HEADS            # 16
QK_DIM = 2 * NH_KD                     # 32
D_V = ATTN_RATIO * KEY_DIM             # 16 (per-head value dim)
V_DIM = D_V * NUM_HEADS                # 32
DIM_H = V_DIM + QK_DIM                 # 64
SCALE = KEY_DIM ** (-0.5)
BN_EPS = 1e-5
B = 2


def _gelu_tanh(x):
    # tanh-form GELU: tanh runs on the EUP (free slot alongside VALU) instead
    # of a long erf polynomial; max abs error ~1e-3, well inside tolerance.
    c = math.sqrt(2.0 / math.pi)
    return 0.5 * x * (1.0 + jnp.tanh(c * (x + 0.044715 * x * x * x)))


# --------------------------- the Pallas kernel ---------------------------
def attention_kernel(x_ref, wpw_ref, bpw_ref, s2_ref, wdw_ref,
                     bnscale_ref, bnshift_ref, bias_ref, wproj_ref, bproj_ref,
                     o_ref):
    bn = x_ref.shape[0]            # B*N tokens (whole batch, single step)
    bsz = bn // N

    # pwconv: 1x1 conv == per-token linear; one bf16 MXU dot for the batch.
    pw = jnp.dot(x_ref[...], wpw_ref[...],
                 preferred_element_type=jnp.float32) + bpw_ref[...]   # (B*N, DIM_H) f32

    v1 = pw[:, QK_DIM:]                                               # (B*N, V_DIM) f32

    # dwconv: depthwise 3x3 (padding=1) as ONE batched dot with K = 9*N.
    # Tap/channel weights are folded into the stacked RHS (rows t*N+m hold
    # v1[:, m, :] * wdw[t, :]); s2_ref is the (B, N, 9*N) flattened 0/1
    # tap/shift matrix (exact in bf16).  Then folded eval BatchNorm + GELU.
    rhs = v1.reshape(bsz, 1, N, V_DIM) * wdw_ref[...]                 # (B, 9, N, V_DIM)
    rhs = rhs.reshape(bsz, 9 * N, V_DIM).astype(jnp.bfloat16)
    dw = jnp.einsum('bnk,bkc->bnc', s2_ref[...], rhs,
                    preferred_element_type=jnp.float32)               # (B, N, V_DIM)
    dw = dw.reshape(bn, V_DIM) * bnscale_ref[...] + bnshift_ref[...]
    v1 = v1 + _gelu_tanh(dw)

    # logits: cast the qk slab to bf16 once, stack every (head, batch) pair on
    # a single batch axis g = h*B + b, one batched MXU dot for all of them.
    qk = pw[:, :QK_DIM].astype(jnp.bfloat16)
    q_all = jnp.concatenate(
        [qk[:, h * KEY_DIM:(h + 1) * KEY_DIM].reshape(bsz, N, KEY_DIM)
         for h in range(NUM_HEADS)], axis=0)                          # (H*B, N, Kd)
    k_all = jnp.concatenate(
        [qk[:, NH_KD + h * KEY_DIM:NH_KD + (h + 1) * KEY_DIM]
         .reshape(bsz, N, KEY_DIM) for h in range(NUM_HEADS)], axis=0)
    logits = jnp.einsum('gnd,gmd->gnm', q_all, k_all,
                        preferred_element_type=jnp.float32) * SCALE
    logits = logits + bias_ref[...]                                   # (H*B, N, N)

    # softmax over keys; approx reciprocal lives on the EUP slot.
    logits = logits - jnp.max(logits, axis=-1, keepdims=True)
    p = jnp.exp(logits)
    attn = p * pl.reciprocal(jnp.sum(p, axis=-1, keepdims=True), approx=True)
    attn = attn.astype(jnp.bfloat16)                                  # (H*B, N, N)

    # epilogue, reassociated: (A @ V) @ Wproj == A @ (V @ Wproj).
    #   vw  : one head-batched dot      (H,  B*N, DIM)
    #   o_g : one (H*B)-batched dot     (H*B, N,  DIM)
    #   head reduction: single VPU add.
    v1_bf = v1.astype(jnp.bfloat16)
    v_stack = jnp.concatenate(
        [v1_bf[:, h * D_V:(h + 1) * D_V][None] for h in range(NUM_HEADS)],
        axis=0)                                                       # (H, B*N, D_V)
    vw = jnp.einsum('hnd,hdc->hnc', v_stack, wproj_ref[...],
                    preferred_element_type=jnp.float32)               # (H, B*N, DIM)
    vw = vw.reshape(NUM_HEADS * bsz, N, DIM).astype(jnp.bfloat16)     # (H*B, N, DIM)
    o_g = jnp.einsum('gnm,gmc->gnc', attn, vw,
                     preferred_element_type=jnp.float32)              # (H*B, N, DIM)
    o = jnp.sum(o_g.reshape(NUM_HEADS, bn, DIM), axis=0) + bproj_ref[...]

    # Lane-dense store: pack groups of 8 token rows side by side on the lane
    # axis -> the (8, 128) output block is written with full, unmasked stores.
    groups = bn // 8
    o_ref[...] = jnp.concatenate(
        [o[g * 8:(g + 1) * 8, :] for g in range(groups)], axis=-1)


def attention_forward(x, params):
    b, n, c = x.shape
    assert n == N and c == DIM
    bn = b * n
    assert bn % 8 == 0, "lane-dense output packing assumes B*N % 8 == 0"
    groups = bn // 8
    lanes = groups * DIM          # 128 for B=2

    # bf16 operands for every MXU dot (f32 accumulation); elementwise math
    # stays f32 inside the kernel.  All layout prep lives here (wrapper-side),
    # not in the kernel.
    x_bf = x.reshape(bn, DIM).astype(jnp.bfloat16)
    wpw_bf = params["wpw"].astype(jnp.bfloat16)
    wproj_bf = params["wproj"].reshape(NUM_HEADS, D_V, DIM).astype(jnp.bfloat16)

    # Depthwise conv operands: flattened (N, 9*N) tap/shift matrix
    # (precomputed once in init_params), broadcast over batch (tiny, 0/1 so
    # the bf16 cast is exact), and tap/channel weights shaped for the
    # in-kernel RHS fold.
    s2b = jnp.broadcast_to(params["shift2"][None], (b, N, 9 * N)).astype(jnp.bfloat16)
    wdw4 = params["wdw"].reshape(1, 9, 1, V_DIM)

    # Attention bias pre-broadcast to the stacked (H*B, N, N) layout used by
    # the kernel (g = h*B + b), so the kernel does a single add.
    bias_g = jnp.broadcast_to(params["bias"][:, None],
                              (NUM_HEADS, b, N, N)).reshape(NUM_HEADS * b, N, N)

    # Whole problem fits VMEM in one shot: no grid, no pipelining, every
    # operand placed whole in VMEM (no double-buffering of unused prefetch).
    # TODO(synk): for large B on v7x, grid over batch chunks with
    # dimension_semantics=("parallel",) to shard across both TensorCores and
    # re-check the 64 MiB VMEM budget.
    vmem = pl.BlockSpec(memory_space=pltpu.MemorySpace.VMEM)
    out2d = pl.pallas_call(
        attention_kernel,
        out_shape=jax.ShapeDtypeStruct((8, lanes), jnp.float32),
        in_specs=[vmem] * 10,
        out_specs=vmem,
    )(x_bf, wpw_bf, params["bpw"], s2b, wdw4,
      params["bnscale"], params["bnshift"], bias_g, wproj_bf, params["bproj"])

    # Undo the lane-dense packing: lane group g holds token rows g*8 .. g*8+7.
    out = out2d.reshape(8, groups, DIM).transpose(1, 0, 2).reshape(b, N, DIM)
    return out


# --------------------------- parameter setup ---------------------------
def init_params(key):
    ks = jax.random.split(key, 6)
    wpw = jax.random.normal(ks[0], (DIM, DIM_H), jnp.float32) * 0.1
    bpw = jax.random.normal(ks[1], (1, DIM_H), jnp.float32) * 0.05

    # depthwise conv weight: PyTorch shape (v_dim, 1, 3, 3) -> (9 taps, v_dim)
    wdw3 = jax.random.normal(ks[2], (V_DIM, 3, 3), jnp.float32) * 0.1
    wdw = jnp.transpose(wdw3.reshape(V_DIM, 9), (1, 0))

    # BatchNorm2d at __init__ (eval semantics): gamma=1, beta=0, mean=0, var=1
    gamma = jnp.ones((V_DIM,), jnp.float32)
    beta = jnp.zeros((V_DIM,), jnp.float32)
    rmean = jnp.zeros((V_DIM,), jnp.float32)
    rvar = jnp.ones((V_DIM,), jnp.float32)
    bnscale = (gamma / jnp.sqrt(rvar + BN_EPS)).reshape(1, V_DIM)
    bnshift = (beta - rmean * gamma / jnp.sqrt(rvar + BN_EPS)).reshape(1, V_DIM)

    # attention biases + relative-position index table (as in the module __init__)
    points = list(itertools.product(range(RES), range(RES)))
    attention_offsets, idxs = {}, []
    for p1 in points:
        for p2 in points:
            off = (abs(p1[0] - p2[0]), abs(p1[1] - p2[1]))
            if off not in attention_offsets:
                attention_offsets[off] = len(attention_offsets)
            idxs.append(attention_offsets[off])
    idxs = np.asarray(idxs, np.int32).reshape(N, N)
    attention_biases = jax.random.normal(
        ks[3], (NUM_HEADS, len(attention_offsets)), jnp.float32) * 0.1
    bias = attention_biases[:, idxs]                            # (H, N, N) == self.ab

    wproj = jax.random.normal(ks[4], (V_DIM, DIM), jnp.float32) * 0.1
    bproj = jax.random.normal(ks[5], (1, DIM), jnp.float32) * 0.05

    # spatial shift matrices for the 3x3 depthwise conv (zero padding=1),
    # flattened once here to the kernel's (N, 9*N) layout: S2[n, t*N+m] = S[t, n, m]
    S = np.zeros((9, N, N), np.float32)
    for t in range(9):
        di, dj = t // 3 - 1, t % 3 - 1
        for i in range(RES):
            for j in range(RES):
                ii, jj = i + di, j + dj
                if 0 <= ii < RES and 0 <= jj < RES:
                    S[t, i * RES + j, ii * RES + jj] = 1.0
    shift2 = jnp.asarray(S.transpose(1, 0, 2).reshape(N, 9 * N))

    return dict(wpw=wpw, bpw=bpw, shift2=shift2, wdw=wdw,
                bnscale=bnscale, bnshift=bnshift, bias=bias,
                wproj=wproj, bproj=bproj)


# --------------------------- pure-JAX reference ---------------------------
def reference_forward(x, params):
    b = x.shape[0]
    pw = jnp.einsum("bnc,cd->bnd", x, params["wpw"]) + params["bpw"][0]
    qk, v1 = pw[..., :QK_DIM], pw[..., QK_DIM:]

    v1_img = v1.reshape(b, RES, RES, V_DIM)
    w_hwio = params["wdw"].reshape(3, 3, V_DIM)[:, :, None, :]     # (3,3,1,Cv)
    dw = jax.lax.conv_general_dilated(
        v1_img, w_hwio, window_strides=(1, 1), padding="SAME",
        dimension_numbers=("NHWC", "HWIO", "NHWC"),
        feature_group_count=V_DIM).reshape(b, N, V_DIM)
    dw = dw * params["bnscale"][0] + params["bnshift"][0]
    v1 = v1 + jax.nn.gelu(dw, approximate=False)

    q = qk[..., :NH_KD].reshape(b, N, NUM_HEADS, KEY_DIM).transpose(0, 2, 1, 3)
    k = qk[..., NH_KD:].reshape(b, N, NUM_HEADS, KEY_DIM).transpose(0, 2, 1, 3)
    v = v1.reshape(b, N, NUM_HEADS, D_V).transpose(0, 2, 1, 3)
    attn = jnp.einsum("bhnd,bhmd->bhnm", q, k) * SCALE + params["bias"][None]
    attn = jax.nn.softmax(attn, axis=-1)
    o = jnp.einsum("bhnm,bhmd->bhnd", attn, v)
    o = o.transpose(0, 2, 1, 3).reshape(b, N, V_DIM)
    return o @ params["wproj"] + params["bproj"][0]


if __name__ == "__main__":
    key = jax.random.PRNGKey(0)
    kx, kp = jax.random.split(key)
    x = jax.random.normal(kx, (B, N, DIM), jnp.float32)
    params = init_params(kp)

    out = jax.block_until_ready(attention_forward(x, params))
    ref = jax.block_until_ready(reference_forward(x, params))

    assert out.shape == (B, N, DIM)
    np.testing.assert_allclose(np.asarray(out), np.asarray(ref), rtol=2e-2, atol=2e-2)
    print("KERNEL_OK")
</pallas_src>

<mosaic_0001>
module attributes {stable_mosaic.version = 11 : i64} {
  func.func @attention_kernel(%arg0: memref<32x32xbf16, #tpu.memory_space<vmem>>, %arg1: memref<32x64xbf16, #tpu.memory_space<vmem>>, %arg2: memref<1x64xf32, #tpu.memory_space<vmem>>, %arg3: memref<2x16x144xbf16, #tpu.memory_space<vmem>>, %arg4: memref<1x9x1x32xf32, #tpu.memory_space<vmem>>, %arg5: memref<1x32xf32, #tpu.memory_space<vmem>>, %arg6: memref<1x32xf32, #tpu.memory_space<vmem>>, %arg7: memref<4x16x16xf32, #tpu.memory_space<vmem>>, %arg8: memref<2x16x32xbf16, #tpu.memory_space<vmem>>, %arg9: memref<1x32xf32, #tpu.memory_space<vmem>>, %arg10: memref<8x128xf32, #tpu.memory_space<vmem>>) attributes {dimension_semantics = [], scalar_prefetch = 0 : i64, scratch_operands = 0 : i64, tpu.core_type = #tpu.core_type<tc>} {
    %c0 = arith.constant 0 : index
    %c0_0 = arith.constant 0 : index
    %0 = vector.load %arg0[%c0, %c0_0] : memref<32x32xbf16, #tpu.memory_space<vmem>>, vector<32x32xbf16>
    %c0_1 = arith.constant 0 : index
    %c0_2 = arith.constant 0 : index
    %1 = vector.load %arg1[%c0_1, %c0_2] : memref<32x64xbf16, #tpu.memory_space<vmem>>, vector<32x64xbf16>
    %cst = arith.constant dense<0.000000e+00> : vector<32x64xf32>
    %2 = tpu.matmul %0, %1, %cst {dimension_numbers = #tpu.dot_dimension_numbers<[1], [0], [0], [1], [0, 0, 1, 1], [], []>} : vector<32x32xbf16>, vector<32x64xbf16>, vector<32x64xf32> -> vector<32x64xf32>
    %c0_3 = arith.constant 0 : index
    %c0_4 = arith.constant 0 : index
    %3 = vector.load %arg2[%c0_3, %c0_4] : memref<1x64xf32, #tpu.memory_space<vmem>>, vector<1x64xf32>
    %4 = vector.broadcast %3 : vector<1x64xf32> to vector<32x64xf32>
    %5 = arith.addf %2, %4 : vector<32x64xf32>
    %6 = vector.extract_strided_slice %5 {offsets = [0, 32], sizes = [32, 32], strides = [1, 1]} : vector<32x64xf32> to vector<32x32xf32>
    %7 = vector.shape_cast %6 : vector<32x32xf32> to vector<2x1x16x32xf32>
    %c0_5 = arith.constant 0 : index
    %c0_6 = arith.constant 0 : index
    %c0_7 = arith.constant 0 : index
    %c0_8 = arith.constant 0 : index
    %8 = vector.load %arg4[%c0_5, %c0_6, %c0_7, %c0_8] : memref<1x9x1x32xf32, #tpu.memory_space<vmem>>, vector<1x9x1x32xf32>
    %9 = vector.broadcast %7 : vector<2x1x16x32xf32> to vector<2x9x16x32xf32>
    %10 = vector.broadcast %8 : vector<1x9x1x32xf32> to vector<2x9x16x32xf32>
    %11 = arith.mulf %9, %10 : vector<2x9x16x32xf32>
    %12 = vector.shape_cast %11 : vector<2x9x16x32xf32> to vector<2x144x32xf32>
    %13 = arith.truncf %12 : vector<2x144x32xf32> to vector<2x144x32xbf16>
    %c0_9 = arith.constant 0 : index
    %c0_10 = arith.constant 0 : index
    %c0_11 = arith.constant 0 : index
    %14 = vector.load %arg3[%c0_9, %c0_10, %c0_11] : memref<2x16x144xbf16, #tpu.memory_space<vmem>>, vector<2x16x144xbf16>
    "tpu.trace_start"() <{level = 10 : i32, message = "bnk,bkc->bnc"}> : () -> ()
    %cst_12 = arith.constant dense<0.000000e+00> : vector<2x16x32xf32>
    %15 = tpu.matmul %14, %13, %cst_12 {dimension_numbers = #tpu.dot_dimension_numbers<[2], [1], [1], [2], [0, 0, 0, 1, 1, 2], [0], [0]>} : vector<2x16x144xbf16>, vector<2x144x32xbf16>, vector<2x16x32xf32> -> vector<2x16x32xf32>
    "tpu.trace_stop"() : () -> ()
    %16 = vector.shape_cast %15 : vector<2x16x32xf32> to vector<32x32xf32>
    %c0_13 = arith.constant 0 : index
    %c0_14 = arith.constant 0 : index
    %17 = vector.load %arg5[%c0_13, %c0_14] : memref<1x32xf32, #tpu.memory_space<vmem>>, vector<1x32xf32>
    %18 = vector.broadcast %17 : vector<1x32xf32> to vector<32x32xf32>
    %19 = arith.mulf %16, %18 : vector<32x32xf32>
    %c0_15 = arith.constant 0 : index
    %c0_16 = arith.constant 0 : index
    %20 = vector.load %arg6[%c0_15, %c0_16] : memref<1x32xf32, #tpu.memory_space<vmem>>, vector<1x32xf32>
    %21 = vector.broadcast %20 : vector<1x32xf32> to vector<32x32xf32>
    %22 = arith.addf %19, %21 : vector<32x32xf32>
    %cst_17 = arith.constant 5.000000e-01 : f32
    %23 = vector.broadcast %cst_17 : f32 to vector<32x32xf32>
    %24 = arith.mulf %23, %22 : vector<32x32xf32>
    %cst_18 = arith.constant 4.471500e-02 : f32
    %25 = vector.broadcast %cst_18 : f32 to vector<32x32xf32>
    %26 = arith.mulf %25, %22 : vector<32x32xf32>
    %27 = arith.mulf %26, %22 : vector<32x32xf32>
    %28 = arith.mulf %27, %22 : vector<32x32xf32>
    %29 = arith.addf %22, %28 : vector<32x32xf32>
    %cst_19 = arith.constant 0.797884583 : f32
    %30 = vector.broadcast %cst_19 : f32 to vector<32x32xf32>
    %31 = arith.mulf %30, %29 : vector<32x32xf32>
    %32 = math.tanh %31 : vector<32x32xf32>
    %cst_20 = arith.constant 1.000000e+00 : f32
    %33 = vector.broadcast %cst_20 : f32 to vector<32x32xf32>
    %34 = arith.addf %33, %32 : vector<32x32xf32>
    %35 = arith.mulf %24, %34 : vector<32x32xf32>
    %36 = arith.addf %6, %35 : vector<32x32xf32>
    %37 = vector.extract_strided_slice %5 {offsets = [0, 0], sizes = [32, 32], strides = [1, 1]} : vector<32x64xf32> to vector<32x32xf32>
    %38 = arith.truncf %37 : vector<32x32xf32> to vector<32x32xbf16>
    %39 = vector.extract_strided_slice %38 {offsets = [0, 0], sizes = [32, 8], strides = [1, 1]} : vector<32x32xbf16> to vector<32x8xbf16>
    %40 = vector.shape_cast %39 : vector<32x8xbf16> to vector<2x16x8xbf16>
    %41 = vector.extract_strided_slice %38 {offsets = [0, 8], sizes = [32, 8], strides = [1, 1]} : vector<32x32xbf16> to vector<32x8xbf16>
    %42 = vector.shape_cast %41 : vector<32x8xbf16> to vector<2x16x8xbf16>
    %43 = tpu.concatenate %40, %42 in 0 : vector<2x16x8xbf16>, vector<2x16x8xbf16> -> vector<4x16x8xbf16>
    %44 = vector.extract_strided_slice %38 {offsets = [0, 16], sizes = [32, 8], strides = [1, 1]} : vector<32x32xbf16> to vector<32x8xbf16>
    %45 = vector.shape_cast %44 : vector<32x8xbf16> to vector<2x16x8xbf16>
    %46 = vector.extract_strided_slice %38 {offsets = [0, 24], sizes = [32, 8], strides = [1, 1]} : vector<32x32xbf16> to vector<32x8xbf16>
    %47 = vector.shape_cast %46 : vector<32x8xbf16> to vector<2x16x8xbf16>
    %48 = tpu.concatenate %45, %47 in 0 : vector<2x16x8xbf16>, vector<2x16x8xbf16> -> vector<4x16x8xbf16>
    "tpu.trace_start"() <{level = 10 : i32, message = "gnd,gmd->gnm"}> : () -> ()
    %cst_21 = arith.constant dense<0.000000e+00> : vector<4x16x16xf32>
    %49 = tpu.matmul %43, %48, %cst_21 {dimension_numbers = #tpu.dot_dimension_numbers<[2], [2], [1], [1], [0, 0, 0, 1, 1, 1], [0], [0]>} : vector<4x16x8xbf16>, vector<4x16x8xbf16>, vector<4x16x16xf32> -> vector<4x16x16xf32>
    "tpu.trace_stop"() : () -> ()
    %cst_22 = arith.constant 0.353553385 : f32
    %50 = vector.broadcast %cst_22 : f32 to vector<4x16x16xf32>
    %51 = arith.mulf %49, %50 : vector<4x16x16xf32>
    %c0_23 = arith.constant 0 : index
    %c0_24 = arith.constant 0 : index
    %c0_25 = arith.constant 0 : index
    %52 = vector.load %arg7[%c0_23, %c0_24, %c0_25] : memref<4x16x16xf32, #tpu.memory_space<vmem>>, vector<4x16x16xf32>
    %53 = arith.addf %51, %52 : vector<4x16x16xf32>
    %cst_26 = arith.constant dense<0xFF800000> : vector<4x16xf32>
    %54 = vector.multi_reduction <maximumf>, %53, %cst_26 [2] : vector<4x16x16xf32> to vector<4x16xf32>
    %55 = vector.shape_cast %54 : vector<4x16xf32> to vector<4x16x1xf32>
    %56 = vector.broadcast %55 : vector<4x16x1xf32> to vector<4x16x16xf32>
    %57 = arith.subf %53, %56 : vector<4x16x16xf32>
    %58 = math.exp %57 : vector<4x16x16xf32>
    %cst_27 = arith.constant dense<0.000000e+00> : vector<4x16xf32>
    %59 = vector.multi_reduction <add>, %58, %cst_27 [2] : vector<4x16x16xf32> to vector<4x16xf32>
    %60 = vector.shape_cast %59 : vector<4x16xf32> to vector<4x16x1xf32>
    %61 = tpu.reciprocal %60 {approx = true} : vector<4x16x1xf32> -> vector<4x16x1xf32>
    %62 = vector.broadcast %61 : vector<4x16x1xf32> to vector<4x16x16xf32>
    %63 = arith.mulf %58, %62 : vector<4x16x16xf32>
    %64 = arith.truncf %63 : vector<4x16x16xf32> to vector<4x16x16xbf16>
    %65 = arith.truncf %36 : vector<32x32xf32> to vector<32x32xbf16>
    %66 = vector.extract_strided_slice %65 {offsets = [0, 0], sizes = [32, 16], strides = [1, 1]} : vector<32x32xbf16> to vector<32x16xbf16>
    %67 = vector.shape_cast %66 : vector<32x16xbf16> to vector<1x32x16xbf16>
    %68 = vector.extract_strided_slice %65 {offsets = [0, 16], sizes = [32, 16], strides = [1, 1]} : vector<32x32xbf16> to vector<32x16xbf16>
    %69 = vector.shape_cast %68 : vector<32x16xbf16> to vector<1x32x16xbf16>
    %70 = tpu.concatenate %67, %69 in 0 : vector<1x32x16xbf16>, vector<1x32x16xbf16> -> vector<2x32x16xbf16>
    %c0_28 = arith.constant 0 : index
    %c0_29 = arith.constant 0 : index
    %c0_30 = arith.constant 0 : index
    %71 = vector.load %arg8[%c0_28, %c0_29, %c0_30] : memref<2x16x32xbf16, #tpu.memory_space<vmem>>, vector<2x16x32xbf16>
    "tpu.trace_start"() <{level = 10 : i32, message = "hnd,hdc->hnc"}> : () -> ()
    %cst_31 = arith.constant dense<0.000000e+00> : vector<2x32x32xf32>
    %72 = tpu.matmul %70, %71, %cst_31 {dimension_numbers = #tpu.dot_dimension_numbers<[2], [1], [1], [2], [0, 0, 0, 1, 1, 2], [0], [0]>} : vector<2x32x16xbf16>, vector<2x16x32xbf16>, vector<2x32x32xf32> -> vector<2x32x32xf32>
    "tpu.trace_stop"() : () -> ()
    %73 = vector.shape_cast %72 : vector<2x32x32xf32> to vector<4x16x32xf32>
    %74 = arith.truncf %73 : vector<4x16x32xf32> to vector<4x16x32xbf16>
    "tpu.trace_start"() <{level = 10 : i32, message = "gnm,gmc->gnc"}> : () -> ()
    %cst_32 = arith.constant dense<0.000000e+00> : vector<4x16x32xf32>
    %75 = tpu.matmul %64, %74, %cst_32 {dimension_numbers = #tpu.dot_dimension_numbers<[2], [1], [1], [2], [0, 0, 0, 1, 1, 2], [0], [0]>} : vector<4x16x16xbf16>, vector<4x16x32xbf16>, vector<4x16x32xf32> -> vector<4x16x32xf32>
    "tpu.trace_stop"() : () -> ()
    %76 = vector.shape_cast %75 : vector<4x16x32xf32> to vector<2x32x32xf32>
    %cst_33 = arith.constant dense<0.000000e+00> : vector<32x32xf32>
    %77 = vector.multi_reduction <add>, %76, %cst_33 [0] : vector<2x32x32xf32> to vector<32x32xf32>
    %c0_34 = arith.constant 0 : index
    %c0_35 = arith.constant 0 : index
    %78 = vector.load %arg9[%c0_34, %c0_35] : memref<1x32xf32, #tpu.memory_space<vmem>>, vector<1x32xf32>
    %79 = vector.broadcast %78 : vector<1x32xf32> to vector<32x32xf32>
    %80 = arith.addf %77, %79 : vector<32x32xf32>
    %81 = vector.extract_strided_slice %80 {offsets = [0, 0], sizes = [8, 32], strides = [1, 1]} : vector<32x32xf32> to vector<8x32xf32>
    %82 = vector.extract_strided_slice %80 {offsets = [8, 0], sizes = [8, 32], strides = [1, 1]} : vector<32x32xf32> to vector<8x32xf32>
    %83 = vector.extract_strided_slice %80 {offsets = [16, 0], sizes = [8, 32], strides = [1, 1]} : vector<32x32xf32> to vector<8x32xf32>
    %84 = vector.extract_strided_slice %80 {offsets = [24, 0], sizes = [8, 32], strides = [1, 1]} : vector<32x32xf32> to vector<8x32xf32>
    %85 = tpu.concatenate %81, %82, %83, %84 in 1 : vector<8x32xf32>, vector<8x32xf32>, vector<8x32xf32>, vector<8x32xf32> -> vector<8x128xf32>
    %c0_36 = arith.constant 0 : index
    %c0_37 = arith.constant 0 : index
    %86 = vector.load %arg10[%c0_36, %c0_37] : memref<8x128xf32, #tpu.memory_space<vmem>>, vector<8x128xf32>
    tpu.vector_store %arg10[%c0_36, %c0_37], %85 {strides = array<i32>} : memref<8x128xf32, #tpu.memory_space<vmem>>, vector<8x128xf32>,
    return
  }
}

</mosaic_0001>

<bundles_post_ra>
// kernel: tpu_custom_call.1
= control target key start
LH: loop header
LB: loop body
LE: loop exit
PB: predicated region body
PF: predicated region fallthrough
CT: control target
= control target key end

     0   :  { %15 = vsyncpa [#allocation3], 0  ;;  %s1987_s0 = inlined_call_operand.hbm [shape: bf16[32,32], index: 0, kind: input, shape index: {}]   ;;  %s1988_s1 = inlined_call_operand.hbm [shape: bf16[32,64], index: 1, kind: input, shape index: {}]   ;;  %s1989_s2 = inlined_call_operand.vmem [shape: f32[1,64], index: 2, kind: input, shape index: {}]   ;;  %s1990_s3 = inlined_call_operand.hbm [shape: bf16[2,16,144], index: 3, kind: input, shape index: {}]   ;;  %s1991_s4 = inlined_call_operand.hbm [shape: f32[1,9,1,32], index: 4, kind: input, shape index: {}]   ;;  %s1992_s5 = inlined_call_operand.vmem [shape: f32[1,32], index: 5, kind: input, shape index: {}]   ;;  %s1993_s6 = inlined_call_operand.vmem [shape: f32[1,32], index: 6, kind: input, shape index: {}]   ;;  %s1994_s7 = inlined_call_operand.hbm [shape: f32[4,16,16], index: 7, kind: input, shape index: {}]   ;;  %s1995_s8 = inlined_call_operand.hbm [shape: bf16[2,16,32], index: 8, kind: input, shape index: {}]   ;;  %s1996_s9 = inlined_call_operand.vmem [shape: f32[1,32], index: 9, kind: input, shape index: {}]   ;;  %s1997_s10 = inlined_call_operand.hbm [shape: f32[8,128], index: 10, kind: output, shape index: {}]  }
   0x1   :  { %16 = vsyncpa [#allocation6], 0 }
   0x2   :  { %17 = vsyncpa [#allocation9], 0 }
   0x3   :  { %18 = vsyncpa [#allocation12], 0 }
   0x4   :  { %19 = vsyncpa [#allocation4], 0  ;;  %s1665_s13 = smov [#allocation5]   ;;  %s1666_s15 = smov [#allocation8]  }
   0x5   :  { %s37_s14 = sshll.u32 %s1665_s13, 4  ;;  %s63_s16 = sshll.u32 %s1666_s15, 4  ;;  %s38_s14 = int_to_ptr.vmem [resolvable:$true] %s37_s14  ;;  %s64_s16 = int_to_ptr.vmem [resolvable:$true] %s63_s16 }
   0x6   :  { %s1523_s17 = scalar_lea.vmem %s38_s14, 256  ;;  %p1528_p1 = scmp.lt.s32.totalorder %s38_s14, %s38_s14 }
   0x7   :  { %p1524_p0 = scmp.ne.s32.totalorder %s38_s14, %s1523_s17  ;;  %p1529_p2 = scmp.lt.s32.totalorder %s1523_s17, %s1523_s17 }
   0x9   :  { %p1530_p3 = por %p1529_p2, %p1528_p1 }
   0xb   :  { %p1531_p4 = pnand %p1530_p3, %p1524_p0 }
   0xd   :  { %1534 = shalt.err (!%p1531_p4)
}
   0xe   :  { %s1667_s18 = smov 64   ;;  %s1668_s19 = smov 4  }
   0xf   :  { %43 = dma.hbm_to_vmem [thread:$0]  %s1988_s1, 256, %s38_s14, [#allocation6], %s1667_s18, %s1667_s18, %s1668_s19  }
  0x10   :  { %s1543_s22 = scalar_lea.vmem %s64_s16, 144  ;;  %s1547_s23 = scalar_lea.vmem %s64_s16, 160 }
  0x11   :  { %p1544_p5 = scmp.ne.s32.totalorder %s64_s16, %s1543_s22  ;;  %p1548_p6 = scmp.lt.s32.totalorder %s64_s16, %s64_s16 }
  0x12   :  { %p1549_p7 = scmp.lt.s32.totalorder %s1547_s23, %s1543_s22 }
  0x14   :  { %p1550_p8 = por %p1549_p7, %p1548_p6 }
  0x16   :  { %p1551_p9 = pnand %p1550_p8, %p1544_p5 }
  0x18   :  { %1554 = shalt.err (!%p1551_p9)
}
  0x19   :  { %s1669_s24 = smov 16   ;;  %s1670_s25 = smov 1  }
  0x1a   :  { %69 = dma.hbm_to_vmem [thread:$0]  %s1991_s4, 144, %s64_s16, [#allocation9], %s1669_s24, %s1669_s24, %s1670_s25  }
  0x1b   :  { %s1671_s28 = smov [#allocation2]   ;;  %s1672_s30 = smov [#allocation7]  }
  0x1c   :  { %s25_s29 = sshll.u32 %s1671_s28, 4  ;;  %s51_s11 = sshll.u32 %s1672_s30, 4  ;;  %s26_s29 = int_to_ptr.vmem [resolvable:$true] %s25_s29  ;;  %s52_s11 = int_to_ptr.vmem [resolvable:$true] %s51_s11 }
  0x1d   :  { %s1563_s1 = scalar_lea.vmem %s26_s29, 256  ;;  %p1568_p11 = scmp.lt.s32.totalorder %s26_s29, %s26_s29 }
  0x1e   :  { %p1564_p10 = scmp.ne.s32.totalorder %s26_s29, %s1563_s1  ;;  %p1569_p12 = scmp.lt.s32.totalorder %s1563_s1, %s1563_s1 }
  0x20   :  { %p1570_p13 = por %p1569_p12, %p1568_p11 }
  0x22   :  { %p1571_p0 = pnand %p1570_p13, %p1564_p10 }
  0x24   :  { %1574 = shalt.err (!%p1571_p0)
}
  0x25   :  { %31 = dma.hbm_to_vmem [thread:$0]  %s1987_s0, 256, %s26_s29, [#allocation3], %s1667_s18, %s1667_s18, %s1668_s19  }
  0x26   :  { %s1583_s4 = scalar_lea.vmem %s52_s11, 512  ;;  %p1588_p2 = scmp.lt.s32.totalorder %s52_s11, %s52_s11 }
  0x27   :  { %p1584_p1 = scmp.ne.s32.totalorder %s52_s11, %s1583_s4  ;;  %p1589_p3 = scmp.lt.s32.totalorder %s1583_s4, %s1583_s4 }
  0x29   :  { %p1590_p4 = por %p1589_p3, %p1588_p2 }
  0x2b   :  { %p1591_p5 = pnand %p1590_p4, %p1584_p1 }
  0x2d   :  { %1594 = shalt.err (!%p1591_p5)
}
  0x2e   :  { %s1673_s14 = smov 128   ;;  %s1674_s15 = smov 8  }
  0x2f   :  { %57 = dma.hbm_to_vmem [thread:$0]  %s1990_s3, 512, %s52_s11, [#allocation6], %s1673_s14, %s1673_s14, %s1674_s15  }
  0x30   :  { %s1675_s20 = smov [#allocation10]   ;;  %s1676_s22 = smov [#allocation11]  }
  0x31   :  { %s79_s21 = sshll.u32 %s1675_s20, 4  ;;  %s91_s23 = sshll.u32 %s1676_s22, 4  ;;  %s80_s21 = int_to_ptr.vmem [resolvable:$true] %s79_s21  ;;  %s92_s23 = int_to_ptr.vmem [resolvable:$true] %s91_s23 }
  0x32   :  { %s1603_s0 = scalar_lea.vmem %s80_s21, 1024  ;;  %p1608_p7 = scmp.lt.s32.totalorder %s80_s21, %s80_s21 }
  0x33   :  { %p1604_p6 = scmp.ne.s32.totalorder %s80_s21, %s1603_s0  ;;  %p1609_p8 = scmp.lt.s32.totalorder %s1603_s0, %s1603_s0 }
  0x35   :  { %p1610_p9 = por %p1609_p8, %p1608_p7 }
  0x37   :  { %p1611_p10 = pnand %p1610_p9, %p1604_p6 }
  0x39   :  { %1614 = shalt.err (!%p1611_p10)
}
  0x3a   :  { %85 = dma.hbm_to_vmem [thread:$0]  %s1994_s7, 1024, %s80_s21, [#allocation9], %s1673_s14, %s1673_s14, %s1674_s15  }
  0x3b   :  { %s1623_s26 = scalar_lea.vmem %s92_s23, 256  ;;  %p1628_p12 = scmp.lt.s32.totalorder %s92_s23, %s92_s23 }
  0x3c   :  { %p1624_p11 = scmp.ne.s32.totalorder %s92_s23, %s1623_s26  ;;  %p1629_p13 = scmp.lt.s32.totalorder %s1623_s26, %s1623_s26 }
  0x3e   :  { %p1630_p0 = por %p1629_p13, %p1628_p12 }
  0x40   :  { %p1631_p1 = pnand %p1630_p0, %p1624_p11 }
  0x42   :  { %1634 = shalt.err (!%p1631_p1)
}
  0x43   :  { %97 = dma.hbm_to_vmem [thread:$0]  %s1995_s8, 256, %s92_s23, [#allocation12], %s1667_s18, %s1667_s18, %s1668_s19  }
  0x44   :  { %1655 = dma.done.wait [#allocation3], 256  }
  0x45   :  { %1656 = vsyncadd [#allocation3], 4294967040 }
  0x46   :  { %1657 = dma.done.wait [#allocation6], 768  }
  0x47   :  { %1658 = vsyncadd [#allocation6], 4294966528 }
  0x48   :  { %1659 = dma.done.wait [#allocation9], 1168  }
  0x49   :  { %1660 = vsyncadd [#allocation9], 4294966128 }
  0x4a   :  { %1661 = dma.done.wait [#allocation12], 256  }
  0x4b   :  { %1662 = vsyncadd [#allocation12], 4294967040  ;;  %v1463_v0 = vld [vmem:[#allocation5 + $0x8] sm:$0xff]   ;;  %v1464_v1 = vld [vmem:[#allocation5] sm:$0xff]   ;;  %vm156_vm0 = vcmask 261120   ;;  %s1677_s7 = smov 32  }
  0x4c   :  { %1375 = vmatprep.subr.bf16.mxu0 %v1463_v0  ;;  %v1465_v2 = vld [vmem:[#allocation2] sm:$0xff]   ;;  %v1466_v5 = vld [vmem:[#allocation2 + $0x8] sm:$0xff]   ;;  %v1678_v13 = vmov 0   ;;  %vm396_vm1 = vcmask 130048   ;;  %s1680_s28 = smov 120   ;;  %s1681_s29 = smov 112  }
  0x4d   :  { %1376 = vmatpush3.bf16.msra.mxu0 %v1463_v0  ;;  %1379 = vmatprep.mubr.msk.bf16.mxu0 %vm156_vm0, %v1465_v2  ;;  %v1324_v3 = vld [vmem:[#allocation8 + $0x7] ss:$0 sm:$0xff]  ;;  %v1322_v4 = vld [vmem:[#allocation8 + $0x5] ss:$0 sm:$0xff]  ;;  %v1323_v6 = vld [vmem:[#allocation8 + $0x6] ss:$0 sm:$0xff] }
  0x4e   :  { %1377 = vmatprep.subr.bf16.mxu0 %v1464_v1  ;;  %280 = vrot.lane.b32.xlu0 %v1324_v3, %s1677_s7  ;;  %v1321_v7 = vld [vmem:[#allocation8 + $0x4] ss:$0 sm:$0xff]  ;;  %v1320_v8 = vld [vmem:[#allocation8 + $0x3] ss:$0 sm:$0xff]  ;;  %v1319_v9 = vld [vmem:[#allocation8 + $0x2] ss:$0 sm:$0xff] }
  0x4f   :  { %276 = vrot.lane.b32.xlu1 %v1322_v4, %s1677_s7  ;;  %v1318_v10 = vld [vmem:[#allocation8 + $0x1] ss:$0 sm:$0xff]  ;;  %v1317_v11 = vld [vmem:[#allocation8] ss:$0 sm:$0xff]  ;;  %v1325_v12 = vld [vmem:[#allocation8 + $0x8] ss:$0 sm:$0xff]  ;;  %400 = vmatprep.subr.bf16.mxu1 %v1678_v13 }
  0x50   :  { %v1310_v15 = vld [vmem:[%s1989_s2] ss:$0 sm:$0xff]  ;;  %s1679_s2 = smov 96   ;;  %vm1683_vm2 = vmmov 0   ;;  %vm618_vm3 = vcmask 64512   ;;  %vm1287_vm4 = vcmask 523264  }
  0x51   :  { %1378 = vmatpush3.bf16.msra.mxu0 %v1464_v1  ;;  %vm1289_vm5 = vcmask 785408  }
  0x52   :  { %278 = vrot.lane.b32.xlu0 %v1323_v6, %s1677_s7  ;;  %489 = vmatprep.subr.bf16.mxu0 %v1678_v13  ;;  %v1467_v6 = vld [vmem:[#allocation7 + $0x14] ss:$8 sps:$4 sm:$0xff]  }
  0x53   :  { %274 = vrot.lane.b32.xlu1 %v1321_v7, %s1677_s7 }
  0x54   :  { %1380 = vmatmul.mubr.msk.bf16.vlgmr.msra.gmra.mxu0 %vm156_vm0, %v1466_v5 }
  0x55   :  { %1331 = vmatprep.mubr.msk.bf16.mxu0 %vm396_vm1, %v1467_v6 }
  0x56   :  { %272 = vrot.lane.b32.xlu0 %v1320_v8, %s1677_s7 }
  0x57   :  { %270 = vrot.lane.b32.xlu1 %v1319_v9, %s1677_s7 }
  0x5a   :  { %268 = vrot.lane.b32.xlu0 %v1318_v10, %s1677_s7  ;;  %v1472_v10 = vld [vmem:[#allocation7 + $0x4] ss:$8 sps:$4 sm:$0xff]  }
  0x5b   :  { %266 = vrot.lane.b32.xlu1 %v1317_v11, %s1677_s7  ;;  %1328 = vmatprep.mubr.msk.bf16.mxu1 %vm396_vm1, %v1472_v10 }
  0x5e   :  { %282 = vrot.lane.b32.xlu0 %v1325_v12, %s1677_s7 }
  0xc0   :  { %v281_v16 = vpop.permute.xlu0 %280 }
  0xc1   :  { %v277_v31 = vpop.permute.xlu1 %276 }
  0xc4   :  { %v279_v26 = vpop.permute.xlu0 %278 }
  0xc5   :  { %v275_v41 = vpop.permute.xlu1 %274 }
  0xc8   :  { %v273_v48 = vpop.permute.xlu0 %272 }
  0xc9   :  { %v271_v55 = vpop.permute.xlu1 %270 }
  0xcc   :  { %v269_v62 = vpop.permute.xlu0 %268 }
  0xcd   :  { %v267_v5 = vpop.permute.xlu1 %266 }
 0x114   :  { %v1381_v14 = vpop.f32.mrf.mxu0 }
 0x115   :  { %v1783_v18 = vadd.f32 %v1381_v14, %v1310_v15 }
 0x116   :  { %v197_v17 = vpop.f32.mrf.mxu0 }
 0x117   :  { %v1785_v20 = vadd.f32 %v1310_v15, %v197_v17  ;;  %v325_v24 = vmul.f32 %v281_v16, %v1783_v18  ;;  %v323_v33 = vmul.f32 %v279_v26, %v1783_v18  ;;  %v321_v39 = vmul.f32 %v277_v31, %v1783_v18 }
 0x118   :  { %v1382_v19 = vpop.f32.mrf.mxu0  ;;  %v319_v46 = vmul.f32 %v275_v41, %v1783_v18  ;;  %v317_v53 = vmul.f32 %v273_v48, %v1783_v18  ;;  %v315_v60 = vmul.f32 %v271_v55, %v1783_v18  ;;  %v313_v3 = vmul.f32 %v269_v62, %v1783_v18 }
 0x119   :  { %v1787_v21 = vadd.f32 %v1382_v19, %v1310_v15  ;;  %v307_v28 = vmul.f32 %v281_v16, %v1785_v20  ;;  %v305_v36 = vmul.f32 %v279_v26, %v1785_v20  ;;  %v303_v43 = vmul.f32 %v277_v31, %v1785_v20 }
 0x11a   :  { %v200_v22 = vpop.f32.mrf.mxu0  ;;  %v301_v50 = vmul.f32 %v275_v41, %v1785_v20  ;;  %v299_v57 = vmul.f32 %v273_v48, %v1785_v20  ;;  %v297_v0 = vmul.f32 %v271_v55, %v1785_v20  ;;  %v295_v8 = vmul.f32 %v269_v62, %v1785_v20 }
 0x11b   :  { %v1789_v23 = vadd.f32 %v1310_v15, %v200_v22  ;;  %v326_v25 = vmul.f32 %v281_v16, %v1787_v21  ;;  %v324_v30 = vmul.f32 %v279_v26, %v1787_v21  ;;  %v322_v37 = vmul.f32 %v277_v31, %v1787_v21  ;;  %v283_v15 = vpop.permute.xlu0 %282 }
 0x11c   :  { %v320_v44 = vmul.f32 %v275_v41, %v1787_v21  ;;  %v318_v51 = vmul.f32 %v273_v48, %v1787_v21  ;;  %v316_v58 = vmul.f32 %v271_v55, %v1787_v21  ;;  %v314_v1 = vmul.f32 %v269_v62, %v1787_v21 }
 0x11d   :  { %v345_v27 = vpack.c.bf16 %v326_v25, %v325_v24  ;;  %v308_v29 = vmul.f32 %v281_v16, %v1789_v23  ;;  %v306_v34 = vmul.f32 %v279_v26, %v1789_v23  ;;  %v344_v35 = vpack.c.bf16 %v324_v30, %v323_v33 }
 0x11e   :  { %v304_v40 = vmul.f32 %v277_v31, %v1789_v23  ;;  %v343_v42 = vpack.c.bf16 %v322_v37, %v321_v39  ;;  %v302_v47 = vmul.f32 %v275_v41, %v1789_v23  ;;  %v342_v49 = vpack.c.bf16 %v320_v44, %v319_v46 }
 0x11f   :  { %473 = vrot.lane.b32.xlu0 %v345_v27, %s1679_s2  ;;  %v336_v32 = vpack.c.bf16 %v308_v29, %v307_v28  ;;  %v335_v38 = vpack.c.bf16 %v306_v34, %v305_v36  ;;  %v300_v54 = vmul.f32 %v273_v48, %v1789_v23  ;;  %v341_v56 = vpack.c.bf16 %v318_v51, %v317_v53  ;;  %v1469_v48 = vld [vmem:[#allocation7 + $0x10] ss:$8 sps:$4 sm:$0xff]  }
 0x120   :  { %v334_v45 = vpack.c.bf16 %v304_v40, %v303_v43  ;;  %v333_v52 = vpack.c.bf16 %v302_v47, %v301_v50  ;;  %v298_v61 = vmul.f32 %v271_v55, %v1789_v23  ;;  %v340_v63 = vpack.c.bf16 %v316_v58, %v315_v60  ;;  %v1470_v50 = vld [vmem:[#allocation7] ss:$8 sps:$4 sm:$0xff]  }
 0x121   :  { %383 = vrot.lane.b32.xlu1 %v336_v32, %s1679_s2  ;;  %v332_v59 = vpack.c.bf16 %v300_v54, %v299_v57  ;;  %v296_v4 = vmul.f32 %v269_v62, %v1789_v23  ;;  %v339_v7 = vpack.c.bf16 %v314_v1, %v313_v3  ;;  %v312_v9 = vmul.f32 %v267_v5, %v1787_v21 }
 0x122   :  { %v331_v2 = vpack.c.bf16 %v298_v61, %v297_v0  ;;  %v311_v11 = vmul.f32 %v267_v5, %v1783_v18  ;;  %v294_v14 = vmul.f32 %v267_v5, %v1789_v23  ;;  %v293_v17 = vmul.f32 %v267_v5, %v1785_v20  ;;  %v1332_v61 = vld [vmem:[%s1992_s5] ss:$0 sm:$0xff] }
 0x123   :  { %471 = vrot.lane.b32.xlu0 %v344_v35, %s1679_s2  ;;  %v330_v12 = vpack.c.bf16 %v296_v4, %v295_v8  ;;  %v328_v19 = vmul.f32 %v283_v15, %v1787_v21  ;;  %v327_v22 = vmul.f32 %v283_v15, %v1783_v18  ;;  %v310_v25 = vmul.f32 %v283_v15, %v1789_v23 }
 0x124   :  { %v338_v16 = vpack.c.bf16 %v312_v9, %v311_v11  ;;  %v329_v24 = vpack.c.bf16 %v294_v14, %v293_v17  ;;  %v309_v27 = vmul.f32 %v283_v15, %v1785_v20  ;;  %v1849_v29 = vpack.c.bf16 %v1787_v21, %v1783_v18 }
 0x125   :  { %381 = vrot.lane.b32.xlu1 %v335_v38, %s1679_s2  ;;  %v346_v26 = vpack.c.bf16 %v328_v19, %v327_v22  ;;  %v1854_v30 = vpack.c.bf16 %v1789_v23, %v1785_v20  ;;  %v1682_v51 = vmov 0.0  }
 0x126   :  { %v337_v28 = vpack.c.bf16 %v310_v25, %v309_v27 }
 0x127   :  { %469 = vrot.lane.b32.xlu0 %v343_v42, %s1679_s2 }
 0x129   :  { %379 = vrot.lane.b32.xlu1 %v334_v45, %s1679_s2 }
 0x12b   :  { %467 = vrot.lane.b32.xlu0 %v342_v49, %s1679_s2 }
 0x12d   :  { %377 = vrot.lane.b32.xlu1 %v333_v52, %s1679_s2 }
 0x12f   :  { %465 = vrot.lane.b32.xlu0 %v341_v56, %s1679_s2 }
 0x131   :  { %375 = vrot.lane.b32.xlu1 %v332_v59, %s1679_s2 }
 0x133   :  { %463 = vrot.lane.b32.xlu0 %v340_v63, %s1679_s2  ;;  %v1333_v63 = vld [vmem:[%s1993_s6] ss:$0 sm:$0xff] }
 0x135   :  { %373 = vrot.lane.b32.xlu1 %v331_v2, %s1679_s2 }
 0x137   :  { %461 = vrot.lane.b32.xlu0 %v339_v7, %s1679_s2 }
 0x139   :  { %371 = vrot.lane.b32.xlu1 %v330_v12, %s1679_s2 }
 0x13b   :  { %459 = vrot.lane.b32.xlu0 %v338_v16, %s1679_s2 }
 0x13d   :  { %369 = vrot.lane.b32.xlu1 %v329_v24, %s1679_s2 }
 0x13f   :  { %475 = vrot.lane.b32.xlu0 %v346_v26, %s1679_s2 }
 0x141   :  { %385 = vrot.lane.b32.xlu1 %v337_v28, %s1679_s2 }
 0x143   :  { %614 = vrot.lane.b32.xlu0 %v1849_v29, %s1680_s28 }
 0x145   :  { %612 = vrot.lane.b32.xlu1 %v1854_v30, %s1680_s28 }
 0x147   :  { %666 = vrot.lane.b32.xlu0 %v1849_v29, %s1681_s29 }
 0x149   :  { %616 = vrot.lane.b32.xlu1 %v1854_v30, %s1681_s29 }
 0x191   :  { %v474_v31 = vpop.permute.xlu0 %473 }
 0x192   :  { %490 = vmatpush1.bf16.msra.mxu0 %v474_v31 }
 0x193   :  { %v384_v32 = vpop.permute.xlu1 %383  ;;  %491 = vmatprep.subr.bf16.mxu0 %v1678_v13 }
 0x194   :  { %401 = vmatpush1.bf16.msra.mxu1 %v384_v32 }
 0x195   :  { %v472_v33 = vpop.permute.xlu0 %471  ;;  %402 = vmatprep.subr.bf16.mxu1 %v1678_v13 }
 0x196   :  { %492 = vmatpush1.bf16.msra.mxu0 %v472_v33 }
 0x197   :  { %v382_v34 = vpop.permute.xlu1 %381  ;;  %493 = vmatprep.subr.bf16.mxu0 %v1678_v13 }
 0x198   :  { %403 = vmatpush1.bf16.msra.mxu1 %v382_v34 }
 0x199   :  { %v470_v35 = vpop.permute.xlu0 %469  ;;  %404 = vmatprep.subr.bf16.mxu1 %v1678_v13 }
 0x19a   :  { %494 = vmatpush1.bf16.msra.mxu0 %v470_v35 }
 0x19b   :  { %v380_v36 = vpop.permute.xlu1 %379  ;;  %495 = vmatprep.subr.bf16.mxu0 %v1678_v13 }
 0x19c   :  { %405 = vmatpush1.bf16.msra.mxu1 %v380_v36 }
 0x19d   :  { %v468_v37 = vpop.permute.xlu0 %467  ;;  %406 = vmatprep.subr.bf16.mxu1 %v1678_v13 }
 0x19e   :  { %496 = vmatpush1.bf16.msra.mxu0 %v468_v37 }
 0x19f   :  { %v378_v38 = vpop.permute.xlu1 %377  ;;  %497 = vmatprep.subr.bf16.mxu0 %v1678_v13 }
 0x1a0   :  { %407 = vmatpush1.bf16.msra.mxu1 %v378_v38 }
 0x1a1   :  { %v466_v39 = vpop.permute.xlu0 %465  ;;  %408 = vmatprep.subr.bf16.mxu1 %v1678_v13 }
 0x1a2   :  { %498 = vmatpush1.bf16.msra.mxu0 %v466_v39 }
 0x1a3   :  { %v376_v40 = vpop.permute.xlu1 %375  ;;  %499 = vmatprep.subr.bf16.mxu0 %v1678_v13 }
 0x1a4   :  { %409 = vmatpush1.bf16.msra.mxu1 %v376_v40 }
 0x1a5   :  { %v464_v41 = vpop.permute.xlu0 %463  ;;  %410 = vmatprep.subr.bf16.mxu1 %v1678_v13 }
 0x1a6   :  { %500 = vmatpush1.bf16.msra.mxu0 %v464_v41 }
 0x1a7   :  { %v374_v42 = vpop.permute.xlu1 %373  ;;  %501 = vmatprep.subr.bf16.mxu0 %v1678_v13 }
 0x1a8   :  { %411 = vmatpush1.bf16.msra.mxu1 %v374_v42 }
 0x1a9   :  { %v462_v43 = vpop.permute.xlu0 %461  ;;  %412 = vmatprep.subr.bf16.mxu1 %v1678_v13 }
 0x1aa   :  { %502 = vmatpush1.bf16.msra.mxu0 %v462_v43 }
 0x1ab   :  { %v372_v44 = vpop.permute.xlu1 %371  ;;  %503 = vmatprep.subr.bf16.mxu0 %v1678_v13 }
 0x1ac   :  { %413 = vmatpush1.bf16.msra.mxu1 %v372_v44 }
 0x1ad   :  { %v460_v45 = vpop.permute.xlu0 %459  ;;  %414 = vmatprep.subr.bf16.mxu1 %v1678_v13 }
 0x1ae   :  { %504 = vmatpush1.bf16.msra.mxu0 %v460_v45 }
 0x1af   :  { %v370_v46 = vpop.permute.xlu1 %369  ;;  %519 = vmatprep.subr.bf16.mxu0 %v1678_v13 }
 0x1b0   :  { %415 = vmatpush1.bf16.msra.mxu1 %v370_v46 }
 0x1b1   :  { %v476_v47 = vpop.permute.xlu0 %475  ;;  %430 = vmatprep.subr.bf16.mxu1 %v1678_v13 }
 0x1b2   :  { %520 = vmatpush2.bf16.msra.mxu0 %v476_v47 }
 0x1b3   :  { %v386_v49 = vpop.permute.xlu1 %385  ;;  %1389 = vmatprep.subr.bf16.mxu0 %v1682_v51 }
 0x1b4   :  { %431 = vmatpush2.bf16.msra.mxu1 %v386_v49 }
 0x1b5   :  { %522 = vmatmul.mubr.bf16.vlgmr.msra.gmra.mxu0 %v1469_v48  ;;  %v615_v52 = vpop.permute.xlu0 %614  ;;  %1383 = vmatprep.subr.bf16.mxu1 %v1682_v51 }
 0x1b6   :  { %764 = vrot.lane.b32.xlu0 %v615_v52, %s1681_s29  ;;  %1391 = vmatprep.mubr.msk.bf16.mxu0 %vm1683_vm2, %v1682_v51 }
 0x1b7   :  { %433 = vmatmul.mubr.bf16.vlgmr.msra.gmra.mxu1 %v1470_v50  ;;  %v613_v13 = vpop.permute.xlu1 %612 }
 0x1b8   :  { %715 = vrot.lane.b32.xlu1 %v613_v13, %s1681_s29  ;;  %1385 = vmatprep.mubr.msk.bf16.mxu1 %vm1683_vm2, %v1682_v51 }
 0x1b9   :  { %v667_v53 = vpop.permute.xlu0 %666 }
 0x1ba   :  { %v672_v54 = vsel %vm618_vm3, %v667_v53, 0 }
 0x1bb   :  { %1390 = vmatpush3.bf16.xpose.msra.mxu0 %v672_v54  ;;  %v617_v55 = vpop.permute.xlu1 %616 }
 0x1bc   :  { %v623_v56 = vsel %vm618_vm3, %v617_v55, 0  ;;  %1401 = vmatprep.subr.bf16.mxu0 %v1682_v51 }
 0x1bd   :  { %1384 = vmatpush3.bf16.xpose.msra.mxu1 %v623_v56 }
 0x1be   :  { %1395 = vmatprep.subr.bf16.mxu1 %v1682_v51 }
 0x1c2   :  { %1392 = vmatmul.mubr.msk.bf16.vlgmr.msra.gmra.mxu0 %vm618_vm3, %v1849_v29 }
 0x1c3   :  { %1403 = vmatprep.mubr.msk.bf16.mxu0 %vm1683_vm2, %v1682_v51 }
 0x1c4   :  { %1386 = vmatmul.mubr.msk.bf16.vlgmr.msra.gmra.mxu1 %vm618_vm3, %v1854_v30 }
 0x1c5   :  { %1397 = vmatprep.mubr.msk.bf16.mxu1 %vm1683_vm2, %v1682_v51 }
 0x228   :  { %v765_v57 = vpop.permute.xlu0 %764 }
 0x229   :  { %v770_v58 = vsel %vm618_vm3, %v765_v57, 0 }
 0x22a   :  { %1402 = vmatpush3.bf16.xpose.msra.mxu0 %v770_v58  ;;  %v716_v59 = vpop.permute.xlu1 %715 }
 0x22b   :  { %v721_v60 = vsel %vm618_vm3, %v716_v59, 0 }
 0x22c   :  { %1396 = vmatpush3.bf16.xpose.msra.mxu1 %v721_v60 }
 0x231   :  { %1404 = vmatmul.mubr.msk.bf16.vlgmr.msra.gmra.mxu0 %vm618_vm3, %v615_v52 }
 0x233   :  { %1398 = vmatmul.mubr.msk.bf16.vlgmr.msra.gmra.mxu1 %vm618_vm3, %v613_v13 }
 0x275   :  { %v523_v62 = vpop.f32.mrf.mxu0 }
 0x276   :  { %v539_v0 = vmul.f32 %v1332_v61, %v523_v62 }
 0x277   :  { %v434_v1 = vpop.f32.mrf.mxu1  ;;  %v525_v2 = vpop.f32.mrf.mxu0 }
 0x278   :  { %v550_v3 = vadd.f32 %v1333_v63, %v539_v0  ;;  %v537_v4 = vmul.f32 %v1332_v61, %v434_v1 }
 0x279   :  { %v436_v5 = vpop.f32.mrf.mxu1  ;;  %v526_v6 = vpop.f32.mrf.mxu0 }
 0x27a   :  { %v558_v7 = vmul.f32 0.044715, %v550_v3  ;;  %v548_v8 = vadd.f32 %v1333_v63, %v537_v4  ;;  %v540_v9 = vmul.f32 %v1332_v61, %v526_v6  ;;  %v554_v58 = vmul.f32 0.5, %v550_v3 }
 0x27b   :  { %v437_v10 = vpop.f32.mrf.mxu1  ;;  %v528_v11 = vpop.f32.mrf.mxu0 }
 0x27c   :  { %v556_v12 = vmul.f32 0.044715, %v548_v8  ;;  %v551_v14 = vadd.f32 %v1333_v63, %v540_v9  ;;  %v538_v15 = vmul.f32 %v1332_v61, %v437_v10  ;;  %v562_v17 = vmul.f32 %v558_v7, %v550_v3 }
 0x27d   :  { %v439_v16 = vpop.f32.mrf.mxu1  ;;  %v552_v50 = vmul.f32 0.5, %v548_v8 }
 0x27e   :  { %v559_v19 = vmul.f32 0.044715, %v551_v14  ;;  %v549_v22 = vadd.f32 %v1333_v63, %v538_v15  ;;  %v560_v24 = vmul.f32 %v556_v12, %v548_v8  ;;  %v566_v25 = vmul.f32 %v562_v17, %v550_v3 }
 0x27f   :  { %v555_v62 = vmul.f32 0.5, %v551_v14 }
 0x280   :  { %v557_v26 = vmul.f32 0.044715, %v549_v22  ;;  %v564_v27 = vmul.f32 %v560_v24, %v548_v8  ;;  %v563_v28 = vmul.f32 %v559_v19, %v551_v14  ;;  %v570_v29 = vadd.f32 %v566_v25, %v550_v3  ;;  %v1473_v3 = vld [vmem:[#allocation11] sm:$0xff]   ;;  %v1474_v24 = vld [vmem:[#allocation11 + $0x8] sm:$0xff]  }
 0x281   :  { %v553_v56 = vmul.f32 0.5, %v549_v22  ;;  %1407 = vmatprep.subr.bf16.mxu1 %v1473_v3  ;;  %1413 = vmatprep.subr.bf16.mxu0 %v1474_v24 }
 0x282   :  { %v1907_v30 = vpop.f32.mrf.mxu0  ;;  %v568_v31 = vadd.f32 %v564_v27, %v548_v8  ;;  %v561_v32 = vmul.f32 %v557_v26, %v549_v22  ;;  %v567_v33 = vmul.f32 %v563_v28, %v551_v14  ;;  %v574_v34 = vmul.f32 0.7978846, %v570_v29  ;;  %1408 = vmatpush3.bf16.msra.mxu1 %v1473_v3  ;;  %1414 = vmatpush3.bf16.msra.mxu0 %v1474_v24  ;;  %v822_v27 = vld [vmem:[#allocation10 + $0x8] sm:$0xff]  ;;  %v821_v28 = vld [vmem:[#allocation10] sm:$0xff] }
 0x283   :  { %1419 = vmatprep.subr.bf16.mxu1 %v1682_v51  ;;  %1425 = vmatprep.subr.bf16.mxu0 %v1682_v51  ;;  %v815_v29 = vmul.f32 0.35355338, %v1907_v30 }
 0x284   :  { %v1909_v35 = vpop.f32.mrf.mxu1  ;;  %v1393_v36 = vpop.f32.mrf.mxu0  ;;  %v572_v37 = vmul.f32 0.7978846, %v568_v31  ;;  %v565_v38 = vmul.f32 %v561_v32, %v549_v22  ;;  %v571_v39 = vadd.f32 %v567_v33, %v551_v14  ;;  %1475 = vtanh.f32 %v574_v34  ;;  %v823_v34 = vld [vmem:[#allocation10 + $0x10] sm:$0xff] }
 0x285   :  { %v813_v26 = vmul.f32 0.35355338, %v1909_v35  ;;  %v824_v36 = vld [vmem:[#allocation10 + $0x18] sm:$0xff]  ;;  %v825_v35 = vld [vmem:[#allocation10 + $0x20] sm:$0xff] }
 0x286   :  { %v1387_v40 = vpop.f32.mrf.mxu1  ;;  %v1911_v41 = vpop.f32.mrf.mxu0  ;;  %1477 = vtanh.f32 %v572_v37  ;;  %v569_v42 = vadd.f32 %v565_v38, %v549_v22  ;;  %v575_v43 = vmul.f32 0.7978846, %v571_v39  ;;  %v831_v39 = vadd.f32 %v823_v34, %v815_v29 }
 0x287   :  { %v816_v32 = vmul.f32 0.35355338, %v1911_v41  ;;  %v829_v33 = vadd.f32 %v821_v28, %v813_v26 }
 0x288   :  { %v1913_v44 = vpop.f32.mrf.mxu1  ;;  %v1394_v45 = vpop.f32.mrf.mxu0  ;;  %v573_v46 = vmul.f32 0.7978846, %v569_v42  ;;  %1479 = vtanh.f32 %v575_v43  ;;  %v843_v30 = vsel %vm396_vm1, %v831_v39, -inf }
 0x289   :  { %v814_v25 = vmul.f32 0.35355338, %v1913_v44  ;;  %v837_v42 = vsel %vm396_vm1, %v829_v33, -inf  ;;  %v832_v43 = vadd.f32 %v824_v36, %v816_v32  ;;  %v826_v44 = vld [vmem:[#allocation10 + $0x28] sm:$0xff] }
 0x28a   :  { %v1388_v47 = vpop.f32.mrf.mxu1  ;;  %1481 = vtanh.f32 %v573_v46 }
 0x28b   :  { %v830_v31 = vadd.f32 %v822_v27, %v814_v25  ;;  %v846_v47 = vsel %vm396_vm1, %v832_v43, -inf }
 0x28d   :  { %v840_v38 = vsel %vm396_vm1, %v830_v31, -inf }
 0x291   :  { %v1476_v48 = vpop.eup %1475 }
 0x292   :  { %v582_v54 = vadd.f32 1.0, %v1476_v48 }
 0x293   :  { %v1478_v49 = vpop.eup %1477 }
 0x294   :  { %v580_v52 = vadd.f32 1.0, %v1478_v49  ;;  %v586_v60 = vmul.f32 %v582_v54, %v554_v58  ;;  %v827_v49 = vld [vmem:[#allocation10 + $0x30] sm:$0xff] }
 0x295   :  { %v1480_v13 = vpop.eup %1479 }
 0x296   :  { %v584_v53 = vmul.f32 %v580_v52, %v552_v50  ;;  %v583_v61 = vadd.f32 1.0, %v1480_v13  ;;  %v828_v50 = vld [vmem:[#allocation10 + $0x38] sm:$0xff] }
 0x297   :  { %v1482_v55 = vpop.eup %1481 }
 0x298   :  { %592 = vrot.lane.b32.xlu1 %v584_v53, %s1677_s7  ;;  %v581_v57 = vadd.f32 1.0, %v1482_v55  ;;  %v587_v63 = vmul.f32 %v583_v61, %v555_v62 }
 0x29a   :  { %v585_v59 = vmul.f32 %v581_v57, %v553_v56 }
 0x29c   :  { %594 = vrot.lane.b32.xlu0 %v585_v59, %s1677_s7  ;;  %596 = vrot.lane.b32.xlu1 %v586_v60, %s1677_s7 }
 0x2a0   :  { %598 = vrot.lane.b32.xlu0 %v587_v63, %s1677_s7 }
 0x2f1   :  { %v806_v0 = vpop.f32.mrf.mxu0 }
 0x2f2   :  { %v819_v45 = vmul.f32 0.35355338, %v806_v0 }
 0x2f3   :  { %v757_v1 = vpop.f32.mrf.mxu1  ;;  %v1405_v2 = vpop.f32.mrf.mxu0 }
 0x2f4   :  { %v817_v37 = vmul.f32 0.35355338, %v757_v1  ;;  %v835_v13 = vadd.f32 %v827_v49, %v819_v45 }
 0x2f5   :  { %v1399_v4 = vpop.f32.mrf.mxu1  ;;  %v809_v5 = vpop.f32.mrf.mxu0 }
 0x2f6   :  { %v833_v46 = vadd.f32 %v825_v35, %v817_v37  ;;  %v820_v41 = vmul.f32 0.35355338, %v809_v5  ;;  %v855_v55 = vsel %vm396_vm1, %v835_v13, -inf }
 0x2f7   :  { %v760_v6 = vpop.f32.mrf.mxu1  ;;  %v1406_v7 = vpop.f32.mrf.mxu0 }
 0x2f8   :  { %v818_v40 = vmul.f32 0.35355338, %v760_v6  ;;  %v849_v52 = vsel %vm396_vm1, %v833_v46, -inf  ;;  %v836_v54 = vadd.f32 %v828_v50, %v820_v41 }
 0x2f9   :  { %v1400_v8 = vpop.f32.mrf.mxu1 }
 0x2fa   :  { %v834_v48 = vadd.f32 %v826_v44, %v818_v40  ;;  %v858_v56 = vsel %vm396_vm1, %v836_v54, -inf }
 0x2fc   :  { %v852_v53 = vsel %vm396_vm1, %v834_v48, -inf }
 0x30a   :  { %v593_v9 = vpop.permute.xlu1 %592 }
 0x30b   :  { %v604_v11 = vadd.f32 %v593_v9, %v1785_v20 }
 0x30e   :  { %v595_v10 = vpop.permute.xlu0 %594  ;;  %v597_v14 = vpop.permute.xlu1 %596 }
 0x30f   :  { %v605_v12 = vadd.f32 %v595_v10, %v1789_v23  ;;  %v606_v17 = vadd.f32 %v597_v14, %v1783_v18 }
 0x311   :  { %v929_v15 = vpack.c.bf16 %v605_v12, %v604_v11 }
 0x312   :  { %v599_v16 = vpop.permute.xlu0 %598 }
 0x313   :  { %v607_v19 = vadd.f32 %v599_v16, %v1787_v21  ;;  %933 = vrot.lane.b32.xlu1 %v929_v15, %s1681_s29 }
 0x315   :  { %v930_v22 = vpack.c.bf16 %v607_v19, %v606_v17 }
 0x317   :  { %941 = vrot.lane.b32.xlu1 %v929_v15, %s1679_s2  ;;  %935 = vrot.lane.b32.xlu0 %v930_v22, %s1681_s29 }
 0x31b   :  { %943 = vrot.lane.b32.xlu0 %v930_v22, %s1679_s2 }
 0x385   :  { %v934_v20 = vpop.permute.xlu1 %933 }
 0x386   :  { %1006 = vrot.lane.b32.xlu1 %v934_v20, %s1679_s2 }
 0x389   :  { %v936_v18 = vpop.permute.xlu0 %935  ;;  %v942_v23 = vpop.permute.xlu1 %941 }
 0x38a   :  { %1008 = vrot.lane.b32.xlu0 %v936_v18, %s1679_s2  ;;  %1409 = vmatprep.mubr.msk.bf16.mxu1 %vm396_vm1, %v942_v23 }
 0x38d   :  { %v944_v21 = vpop.permute.xlu0 %943 }
 0x38e   :  { %1410 = vmatmul.mubr.msk.bf16.vlgmr.msra.gmra.mxu1 %vm396_vm1, %v944_v21 }
 0x38f   :  { %1421 = vmatprep.mubr.msk.bf16.mxu1 %vm1683_vm2, %v1682_v51 }
 0x3a9   :  { %841 = vmax.xlane.f32.xlu0 %v840_v38 }
 0x3aa   :  { %838 = vmax.xlane.f32.xlu1 %v837_v42 }
 0x3ad   :  { %844 = vmax.xlane.f32.xlu0 %v843_v30 }
 0x3ae   :  { %847 = vmax.xlane.f32.xlu1 %v846_v47 }
 0x3b1   :  { %850 = vmax.xlane.f32.xlu0 %v849_v52 }
 0x3b2   :  { %853 = vmax.xlane.f32.xlu1 %v852_v53 }
 0x3b5   :  { %856 = vmax.xlane.f32.xlu0 %v855_v55 }
 0x3b6   :  { %859 = vmax.xlane.f32.xlu1 %v858_v56 }
 0x3f8   :  { %v1007_v57 = vpop.permute.xlu1 %1006 }
 0x3f9   :  { %1415 = vmatprep.mubr.msk.bf16.mxu0 %vm396_vm1, %v1007_v57 }
 0x3fc   :  { %v1009_v58 = vpop.permute.xlu0 %1008 }
 0x3fd   :  { %1416 = vmatmul.mubr.msk.bf16.vlgmr.msra.gmra.mxu0 %vm396_vm1, %v1009_v58 }
 0x3fe   :  { %1427 = vmatprep.mubr.msk.bf16.mxu0 %vm1683_vm2, %v1682_v51 }
 0x432   :  { %v842_v59 = vpop.xlane.xlu0 %841 }
 0x433   :  { %v862_v60 = vsub.f32 %v830_v31, %v842_v59  ;;  %v839_v61 = vpop.xlane.xlu1 %838 }
 0x434   :  { %v861_v62 = vsub.f32 %v829_v33, %v839_v61 }
 0x435   :  { %v871_v63 = vmul.f32 1.442695, %v862_v60 }
 0x436   :  { %v869_v0 = vmul.f32 1.442695, %v861_v62  ;;  %v845_v1 = vpop.xlane.xlu0 %844 }
 0x437   :  { %1483 = vpow2.f32 %v871_v63  ;;  %v863_v2 = vsub.f32 %v831_v39, %v845_v1  ;;  %v848_v4 = vpop.xlane.xlu1 %847 }
 0x438   :  { %1485 = vpow2.f32 %v869_v0  ;;  %v864_v5 = vsub.f32 %v832_v43, %v848_v4 }
 0x439   :  { %v873_v6 = vmul.f32 1.442695, %v863_v2 }
 0x43a   :  { %v875_v7 = vmul.f32 1.442695, %v864_v5  ;;  %v851_v8 = vpop.xlane.xlu0 %850 }
 0x43b   :  { %1487 = vpow2.f32 %v873_v6  ;;  %v865_v3 = vsub.f32 %v833_v46, %v851_v8  ;;  %v854_v9 = vpop.xlane.xlu1 %853 }
 0x43c   :  { %1489 = vpow2.f32 %v875_v7  ;;  %v866_v10 = vsub.f32 %v834_v48, %v854_v9 }
 0x43d   :  { %v877_v11 = vmul.f32 1.442695, %v865_v3 }
 0x43e   :  { %v879_v12 = vmul.f32 1.442695, %v866_v10  ;;  %v857_v14 = vpop.xlane.xlu0 %856 }
 0x43f   :  { %1491 = vpow2.f32 %v877_v11  ;;  %v867_v15 = vsub.f32 %v835_v13, %v857_v14  ;;  %v860_v16 = vpop.xlane.xlu1 %859 }
 0x440   :  { %1493 = vpow2.f32 %v879_v12  ;;  %v868_v17 = vsub.f32 %v836_v54, %v860_v16 }
 0x441   :  { %v881_v19 = vmul.f32 1.442695, %v867_v15 }
 0x442   :  { %v883_v22 = vmul.f32 1.442695, %v868_v17 }
 0x443   :  { %1495 = vpow2.f32 %v881_v19 }
 0x444   :  { %v1484_v24 = vpop.eup %1483  ;;  %1497 = vpow2.f32 %v883_v22 }
 0x445   :  { %v1486_v20 = vpop.eup %1485  ;;  %v888_v18 = vsel %vm396_vm1, %v1484_v24, 0.0 }
 0x446   :  { %889 = vadd.xlane.f32.xlu1 %v888_v18  ;;  %v885_v23 = vsel %vm396_vm1, %v1486_v20, 0.0  ;;  %v1348_v18 = vld [vmem:[%s1996_s9] ss:$0 sm:$0xff]  ;;  %s1684_s9 = smov [#allocation13]  }
 0x447   :  { %886 = vadd.xlane.f32.xlu0 %v885_v23  ;;  %s1298_s13 = sshll.u32 %s1684_s9, 4  ;;  %s1299_s13 = int_to_ptr.vmem [resolvable:$true] %s1298_s13 }
 0x448   :  { %v1488_v21 = vpop.eup %1487  ;;  %s1635_s4 = scalar_lea.vmem %s1299_s13, 128  ;;  %p1640_p3 = scmp.lt.s32.totalorder %s1299_s13, %s1299_s13 }
 0x449   :  { %v1490_v25 = vpop.eup %1489  ;;  %v891_v26 = vsel %vm396_vm1, %v1488_v21, 0.0  ;;  %p1636_p2 = scmp.ne.s32.totalorder %s1299_s13, %s1635_s4  ;;  %p1641_p4 = scmp.lt.s32.totalorder %s1635_s4, %s1635_s4 }
 0x44a   :  { %v894_v27 = vsel %vm396_vm1, %v1490_v25, 0.0 }
 0x44b   :  { %892 = vadd.xlane.f32.xlu0 %v891_v26  ;;  %895 = vadd.xlane.f32.xlu1 %v894_v27  ;;  %p1642_p5 = por %p1641_p4, %p1640_p3 }
 0x44c   :  { %v1492_v28 = vpop.eup %1491 }
 0x44d   :  { %v1494_v29 = vpop.eup %1493  ;;  %v897_v31 = vsel %vm396_vm1, %v1492_v28, 0.0  ;;  %p1643_p6 = pnand %p1642_p5, %p1636_p2 }
 0x44e   :  { %v1411_v32 = vpop.f32.mrf.mxu1  ;;  %v900_v33 = vsel %vm396_vm1, %v1494_v29, 0.0 }
 0x44f   :  { %898 = vadd.xlane.f32.xlu0 %v897_v31  ;;  %901 = vadd.xlane.f32.xlu1 %v900_v33 }
 0x450   :  { %v1496_v34 = vpop.eup %1495  ;;  %v991_v36 = vpop.f32.mrf.mxu1 }
 0x451   :  { %v1498_v37 = vpop.eup %1497  ;;  %v903_v38 = vsel %vm396_vm1, %v1496_v34, 0.0 }
 0x452   :  { %v1412_v39 = vpop.f32.mrf.mxu1  ;;  %v906_v40 = vsel %vm396_vm1, %v1498_v37, 0.0 }
 0x453   :  { %v1072_v42 = vpack.c.bf16 %v1412_v39, %v1411_v32  ;;  %904 = vadd.xlane.f32.xlu0 %v903_v38  ;;  %907 = vadd.xlane.f32.xlu1 %v906_v40 }
 0x454   :  { %v994_v43 = vpop.f32.mrf.mxu1 }
 0x455   :  { %v1071_v35 = vpack.c.bf16 %v994_v43, %v991_v36  ;;  %1426 = vmatpush3.bf16.msra.mxu0 %v1072_v42 }
 0x456   :  { %1437 = vmatprep.subr.bf16.mxu0 %v1682_v51 }
 0x457   :  { %1420 = vmatpush3.bf16.msra.mxu1 %v1071_v35 }
 0x458   :  { %1431 = vmatprep.subr.bf16.mxu1 %v1682_v51 }
 0x4bd   :  { %v1417_v30 = vpop.f32.mrf.mxu0 }
 0x4bf   :  { %v1056_v47 = vpop.f32.mrf.mxu0 }
 0x4c1   :  { %v1418_v50 = vpop.f32.mrf.mxu0 }
 0x4c2   :  { %v1074_v4 = vpack.c.bf16 %v1418_v50, %v1417_v30 }
 0x4c3   :  { %v1059_v56 = vpop.f32.mrf.mxu0 }
 0x4c4   :  { %v1073_v60 = vpack.c.bf16 %v1059_v56, %v1056_v47 }
 0x4cf   :  { %v890_v44 = vpop.xlane.xlu1 %889 }
 0x4d0   :  { %1499 = vrcp.f32 %v890_v44  ;;  %v887_v45 = vpop.xlane.xlu0 %886 }
 0x4d1   :  { %1501 = vrcp.f32 %v887_v45 }
 0x4d4   :  { %v893_v46 = vpop.xlane.xlu0 %892  ;;  %v896_v41 = vpop.xlane.xlu1 %895 }
 0x4d5   :  { %1503 = vrcp.f32 %v893_v46 }
 0x4d6   :  { %1505 = vrcp.f32 %v896_v41 }
 0x4d8   :  { %v899_v48 = vpop.xlane.xlu0 %898  ;;  %v902_v49 = vpop.xlane.xlu1 %901 }
 0x4d9   :  { %1507 = vrcp.f32 %v899_v48 }
 0x4da   :  { %1509 = vrcp.f32 %v902_v49 }
 0x4dc   :  { %v905_v52 = vpop.xlane.xlu0 %904  ;;  %v908_v13 = vpop.xlane.xlu1 %907 }
 0x4dd   :  { %v1500_v53 = vpop.eup %1499  ;;  %1511 = vrcp.f32 %v905_v52 }
 0x4de   :  { %v1502_v54 = vpop.eup %1501  ;;  %1513 = vrcp.f32 %v908_v13  ;;  %v918_v55 = vmul.f32 %v1500_v53, %v1484_v24 }
 0x4df   :  { %v917_v57 = vmul.f32 %v1502_v54, %v1486_v20 }
 0x4e1   :  { %v925_v58 = vpack.c.bf16 %v918_v55, %v917_v57 }
 0x4e2   :  { %v1504_v59 = vpop.eup %1503 }
 0x4e3   :  { %v1506_v61 = vpop.eup %1505  ;;  %1422 = vmatmul.mubr.msk.bf16.vlgmr.msra.gmra.mxu1 %vm396_vm1, %v925_v58  ;;  %v919_v62 = vmul.f32 %v1504_v59, %v1488_v21 }
 0x4e4   :  { %1432 = vmatpush3.bf16.msra.mxu1 %v1073_v60  ;;  %v920_v63 = vmul.f32 %v1506_v61, %v1490_v25  ;;  %1433 = vmatprep.mubr.msk.bf16.mxu1 %vm1683_vm2, %v1682_v51 }
 0x4e6   :  { %v1508_v0 = vpop.eup %1507  ;;  %v926_v1 = vpack.c.bf16 %v920_v63, %v919_v62 }
 0x4e7   :  { %v1510_v2 = vpop.eup %1509  ;;  %v921_v5 = vmul.f32 %v1508_v0, %v1492_v28 }
 0x4e8   :  { %1428 = vmatmul.mubr.msk.bf16.vlgmr.msra.gmra.mxu0 %vm396_vm1, %v926_v1  ;;  %v922_v6 = vmul.f32 %v1510_v2, %v1494_v29 }
 0x4e9   :  { %1438 = vmatpush3.bf16.msra.mxu0 %v1074_v4  ;;  %1439 = vmatprep.mubr.msk.bf16.mxu0 %vm1683_vm2, %v1682_v51 }
 0x4ea   :  { %v1512_v7 = vpop.eup %1511  ;;  %v927_v8 = vpack.c.bf16 %v922_v6, %v921_v5 }
 0x4eb   :  { %v1514_v3 = vpop.eup %1513  ;;  %v923_v9 = vmul.f32 %v1512_v7, %v1496_v34 }
 0x4ec   :  { %1434 = vmatmul.mubr.msk.bf16.vlgmr.msra.gmra.mxu1 %vm396_vm1, %v927_v8  ;;  %v924_v10 = vmul.f32 %v1514_v3, %v1498_v37 }
 0x4ee   :  { %v928_v11 = vpack.c.bf16 %v924_v10, %v923_v9 }
 0x4f0   :  { %1440 = vmatmul.mubr.msk.bf16.vlgmr.msra.gmra.mxu0 %vm396_vm1, %v928_v11 }
 0x5a3   :  { %v1112_v12 = vpop.f32.mrf.mxu1 }
 0x5a4   :  { %v1251_v51 = vsel %vm156_vm0, %v1112_v12, 0.0 }
 0x5a5   :  { %v1423_v14 = vpop.f32.mrf.mxu1 }
 0x5a7   :  { %v1115_v15 = vpop.f32.mrf.mxu1 }
 0x5a8   :  { %v1156_v16 = vpop.f32.mrf.mxu0  ;;  %v1254_v29 = vsel %vm156_vm0, %v1115_v15, 0.0 }
 0x5a9   :  { %v1424_v17 = vpop.f32.mrf.mxu1  ;;  %v1257_v31 = vsel %vm156_vm0, %v1156_v16, 0.0 }
 0x5aa   :  { %v1429_v19 = vpop.f32.mrf.mxu0 }
 0x5ac   :  { %v1159_v22 = vpop.f32.mrf.mxu0  ;;  %v1200_v24 = vpop.f32.mrf.mxu1 }
 0x5ad   :  { %v1252_v20 = vsel %vm156_vm0, %v1200_v24, 0.0  ;;  %v1260_v43 = vsel %vm156_vm0, %v1159_v22, 0.0 }
 0x5ae   :  { %v1253_v23 = vadd.f32 %v1252_v20, %v1251_v51  ;;  %v1430_v21 = vpop.f32.mrf.mxu0  ;;  %v1435_v25 = vpop.f32.mrf.mxu1 }
 0x5b0   :  { %v1270_v26 = vadd.f32 %v1348_v18, %v1253_v23  ;;  %v1203_v27 = vpop.f32.mrf.mxu1  ;;  %v1244_v28 = vpop.f32.mrf.mxu0 }
 0x5b1   :  { %v1255_v32 = vsel %vm156_vm0, %v1203_v27, 0.0  ;;  %v1258_v33 = vsel %vm156_vm0, %v1244_v28, 0.0 }
 0x5b2   :  { %v1256_v34 = vadd.f32 %v1255_v32, %v1254_v29  ;;  %v1259_v36 = vadd.f32 %v1258_v33, %v1257_v31  ;;  %v1436_v37 = vpop.f32.mrf.mxu1  ;;  %v1441_v38 = vpop.f32.mrf.mxu0 }
 0x5b4   :  { %v1271_v39 = vadd.f32 %v1348_v18, %v1256_v34  ;;  %v1247_v40 = vpop.f32.mrf.mxu0  ;;  %v1272_v42 = vadd.f32 %v1348_v18, %v1259_v36 }
 0x5b5   :  { %v1261_v35 = vsel %vm156_vm0, %v1247_v40, 0.0 }
 0x5b6   :  { %v1262_v44 = vadd.f32 %v1261_v35, %v1260_v43  ;;  %1275 = vrot.lane.b32.xlu0 %v1271_v39, %s1677_s7  ;;  %1279 = vrot.lane.b32.xlu1 %v1272_v42, %s1667_s18  ;;  %v1442_v45 = vpop.f32.mrf.mxu0 }
 0x5b8   :  { %v1273_v30 = vadd.f32 %v1348_v18, %v1262_v44 }
 0x5ba   :  { %1283 = vrot.lane.b32.xlu1 %v1273_v30, %s1679_s2 }
 0x628   :  { %v1276_v46 = vpop.permute.xlu0 %1275  ;;  %v1280_v41 = vpop.permute.xlu1 %1279 }
 0x629   :  { %v1286_v47 = vsel %vm156_vm0, %v1270_v26, %v1276_v46 }
 0x62a   :  { %v1288_v48 = vsel %vm1287_vm4, %v1286_v47, %v1280_v41 }
 0x62c   :  { %v1284_v49 = vpop.permute.xlu1 %1283 }
 0x62d   :  { %v1290_v50 = vsel %vm1289_vm5, %v1288_v48, %v1284_v49 }
 0x62e   :  { %1291 = vst [vmem:[#allocation13] sm:$0xff] %v1290_v50 }
 0x62f   :  { %1646 = shalt.err (!%p1643_p6)
}
 0x630   :  { %1301 = dma.vmem_to_hbm [thread:$0]  %s1299_s13, 128, %s1997_s10, [#allocation4]  }
 0x631   :  { %1663 = dma.done.wait [#allocation4], 128  }
 0x632   :  { %1664 = vsyncadd [#allocation4], 4294967168 }
 0x633   :  { %1305 = vsyncpa [#allocation3], 1 }
 0x634   :  { %1306 = vsyncpa [#allocation6], 1 }
 0x635   :  { %1307 = vsyncpa [#allocation9], 1 }
 0x636   :  { %1308 = vsyncpa [#allocation12], 1 }
 0x637   :  { %1309 = vsyncpa [#allocation4], 1 }

</bundles_post_ra>
